<compile_context>
chip_gen: v7x
topology: tpu7x:2x2x1
jax: 0.10.0
libtpu: 0.0.40
codegen_flags: <defaults>
</compile_context>

<pallas_src>
import math

import jax
import jax.numpy as jnp
import numpy as np
from jax.experimental import pallas as pl
from jax.experimental.pallas import tpu as pltpu


def _round_up(x, m):
    return (x + m - 1) // m * m


# ------------------------------ Pallas kernel --------------------------------

def _make_ensemble_linear_kernel(*, has_bias, resnet, densenet, n_main_blocks,
                                 multi_k):
    """Kernel body for grid (E, M_blocks, J_blocks, K_blocks), K innermost.

    Ref order: x, w, [bias], [x_res], [x_slab], out, [f32 accumulator scratch].
    """

    def kernel(*refs):
        pos = 0
        x_ref = refs[pos]; pos += 1
        w_ref = refs[pos]; pos += 1
        b_ref = None
        if has_bias:
            b_ref = refs[pos]; pos += 1
        xres_ref = None
        if resnet:
            xres_ref = refs[pos]; pos += 1
        xslab_ref = None
        if densenet:
            xslab_ref = refs[pos]; pos += 1
        o_ref = refs[pos]; pos += 1
        acc_ref = refs[pos] if multi_k else None

        j = pl.program_id(2)
        k = pl.program_id(3)
        nk = pl.num_programs(3)

        def finalize(acc_f32):
            out = acc_f32
            if has_bias:
                out = out + b_ref[0].astype(jnp.float32)
            if resnet:
                out = out + xres_ref[0].astype(jnp.float32)
            o_ref[0] = out.astype(o_ref.dtype)

        def matmul_step():
            if multi_k:
                # init the f32 accumulator at the first K step
                @pl.when(k == 0)
                def _():
                    acc_ref[...] = jnp.zeros_like(acc_ref)

                acc_ref[...] += jnp.dot(x_ref[0], w_ref[0],
                                        preferred_element_type=jnp.float32)

                # finalize (bias / residual add + lane-dense store) at last K
                @pl.when(k == nk - 1)
                def _():
                    finalize(acc_ref[...])
            else:
                # single K tile: no accumulator / zero-init needed
                finalize(jnp.dot(x_ref[0], w_ref[0],
                                 preferred_element_type=jnp.float32))

        if densenet:
            @pl.when(j < n_main_blocks)
            def _():
                matmul_step()

            # fused 'densenet' concat: j-blocks past the matmul slab are plain
            # lane-dense copies of x tiles into the output.
            @pl.when(jnp.logical_and(j >= n_main_blocks, k == nk - 1))
            def _():
                o_ref[0] = xslab_ref[0].astype(o_ref.dtype)
        else:
            matmul_step()

    return kernel


def ensemble_linear_pallas(x, weight, bias=None, connection="simple",
                           compute_dtype=None):
    """x: (Ex, B, K) with Ex in {1, E}; weight: (E, K, N); bias: (E, 1, N)|None."""
    E, K, N = weight.shape
    Ex, B, Kx = x.shape
    assert Kx == K and Ex in (1, E)
    has_bias = bias is not None
    resnet = connection == "resnet"
    densenet = connection == "densenet"
    if resnet:
        assert N == K

    out_dtype = x.dtype
    if compute_dtype is not None and jnp.dtype(compute_dtype) != jnp.dtype(x.dtype):
        # e.g. bf16 operands (v5e-friendly); accumulation stays f32 in-kernel.
        x = x.astype(compute_dtype)
        weight = weight.astype(compute_dtype)
        if has_bias:
            bias = bias.astype(compute_dtype)
    cdtype = jnp.dtype(x.dtype)
    in_itemsize = cdtype.itemsize
    out_itemsize = jnp.dtype(out_dtype).itemsize

    # Fuse the densenet concat in-kernel only when the matmul slab is already
    # lane-dense (N multiple of 128); otherwise pad N and concat in the wrapper.
    fuse_densenet = densenet and (N % 128 == 0)

    # ---------------- tile selection (multiples of (sublane, 128)) ----------
    sublane = max(8, 32 // in_itemsize)                 # 8 (f32) / 16 (bf16)
    tm = min(_round_up(B, sublane), 256)
    if fuse_densenet:
        tn = next(t for t in (512, 256, 128) if N % t == 0)
        tk = tn                                         # slab copy reuses lane tiling
    else:
        tn = min(_round_up(N, 128), 512)
        tk = min(_round_up(K, 128), 512)
        if resnet:                                      # residual tile lines up with
            tk = tn                                     # the output tile (N == K)
    m_pad = _round_up(B, tm)
    n_pad = _round_up(N, tn)
    k_pad = _round_up(K, tk)

    n_main_blocks = n_pad // tn
    n_slab_blocks = (k_pad // tn) if fuse_densenet else 0
    j_blocks = n_main_blocks + n_slab_blocks
    n_total = n_pad + (k_pad if fuse_densenet else 0)
    k_blocks = k_pad // tk
    multi_k = k_blocks > 1
    grid = (E, m_pad // tm, j_blocks, k_blocks)

    # zero-pad operands (zeros do not change the result; padding sliced off below)
    xp = x if (m_pad == B and k_pad == K) else jnp.pad(
        x, ((0, 0), (0, m_pad - B), (0, k_pad - K)))
    wp = weight if (k_pad == K and n_pad == N) else jnp.pad(
        weight, ((0, 0), (0, k_pad - K), (0, n_pad - N)))
    bp = None
    if has_bias:
        bp = bias if n_pad == N else jnp.pad(bias, ((0, 0), (0, 0), (0, n_pad - N)))

    ex_blk = (lambda e: e) if Ex == E else (lambda e: 0)

    # ------------------------------- BlockSpecs ------------------------------
    if fuse_densenet:
        # For slab j-blocks the matmul operands are unused: clamp / freeze their
        # block indices so the pipeline issues no useless DMAs.
        x_idx = lambda e, i, j, k: (ex_blk(e), i,
                                    jnp.where(j < n_main_blocks, k, 0))
        w_idx = lambda e, i, j, k: (e, jnp.where(j < n_main_blocks, k, 0),
                                    jnp.minimum(j, n_main_blocks - 1))
        b_idx = lambda e, i, j, k: (e, 0, jnp.minimum(j, n_main_blocks - 1))
    else:
        x_idx = lambda e, i, j, k: (ex_blk(e), i, k)
        w_idx = lambda e, i, j, k: (e, k, j)
        b_idx = lambda e, i, j, k: (e, 0, j)

    in_specs = [pl.BlockSpec((1, tm, tk), x_idx),
                pl.BlockSpec((1, tk, tn), w_idx)]
    inputs = [xp, wp]
    if has_bias:
        in_specs.append(pl.BlockSpec((1, 1, tn), b_idx))
        inputs.append(bp)
    if resnet:
        # Independently (i, j)-indexed view of x for the residual add at the
        # finalize step; block index is K-invariant so the tile stays resident.
        in_specs.append(pl.BlockSpec(
            (1, tm, tn), lambda e, i, j, k: (ex_blk(e), i, j)))
        inputs.append(xp)
    if fuse_densenet:
        # (i, j)-indexed view of x used by the fused-concat slab blocks.
        in_specs.append(pl.BlockSpec(
            (1, tm, tn),
            lambda e, i, j, k: (ex_blk(e), i,
                                jnp.maximum(j - n_main_blocks, 0))))
        inputs.append(xp)

    out_spec = pl.BlockSpec((1, tm, tn), lambda e, i, j, k: (e, i, j))

    kernel = _make_ensemble_linear_kernel(
        has_bias=has_bias, resnet=resnet, densenet=fuse_densenet,
        n_main_blocks=n_main_blocks, multi_k=multi_k)

    # --------------------------- cost / VMEM budget --------------------------
    flops = 2 * E * m_pad * k_pad * n_pad
    bytes_accessed = int((xp.size + wp.size + (bp.size if has_bias else 0))
                         * in_itemsize + E * m_pad * n_total * out_itemsize)
    cost = pl.CostEstimate(flops=flops, transcendentals=0,
                           bytes_accessed=bytes_accessed)

    vmem_needed = 2 * (tm * tk + tk * tn) * in_itemsize      # x, w (double-buffered)
    vmem_needed += 2 * tm * tn * out_itemsize                # out (double-buffered)
    if has_bias:
        vmem_needed += 2 * tn * in_itemsize
    if resnet or fuse_densenet:
        vmem_needed += 2 * tm * tn * in_itemsize             # extra x view
    if multi_k:
        vmem_needed += tm * tn * 4                           # f32 accumulator
    vmem_limit = int(min(max(4 * vmem_needed, 32 * 1024 * 1024),
                         64 * 1024 * 1024))                  # safe on v5e/v6e/v7x

    scratch_shapes = [pltpu.VMEM((tm, tn), jnp.float32)] if multi_k else []

    out = pl.pallas_call(
        kernel,
        out_shape=jax.ShapeDtypeStruct((E, m_pad, n_total), out_dtype),
        grid_spec=pltpu.PrefetchScalarGridSpec(
            num_scalar_prefetch=0,
            grid=grid,
            in_specs=in_specs,
            out_specs=out_spec,
            scratch_shapes=scratch_shapes),
        compiler_params=pltpu.CompilerParams(
            dimension_semantics=("parallel", "parallel", "parallel", "arbitrary"),
            vmem_limit_bytes=vmem_limit),
        cost_estimate=cost,
    )(*inputs)

    # ---------------------------- strip the padding ---------------------------
    if fuse_densenet:
        # columns [0, N) = matmul(+bias), [N, N+K) = copy of x (n_pad == N here)
        return out[:, :B, :N + K]
    result = out[:, :B, :N]
    if densenet:
        # TODO(synk): when out_features % 128 != 0 the concat stays in the
        # wrapper (the fused in-kernel concat needs a lane-dense matmul slab).
        xb = jnp.broadcast_to(x, (E, B, K)).astype(out_dtype)
        result = jnp.concatenate([result, xb], axis=-1)
    return result


# -------------------------------- Module port --------------------------------

def _orthogonal(key, rows, cols, dtype=jnp.float32):
    """Mimic torch.nn.init.orthogonal_ for a (rows, cols) matrix."""
    big, small = max(rows, cols), min(rows, cols)
    a = jax.random.normal(key, (big, small), jnp.float32)
    q, r = jnp.linalg.qr(a)
    d = jnp.diag(r)
    q = q * jnp.where(d >= 0, 1.0, -1.0)[None, :]   # sign fix (never zeroes a column)
    if rows < cols:
        q = q.T
    return q.astype(dtype)


class MyEnsembleLinearPallas:
    """JAX/Pallas equivalent of IAIU MyEnsembleLinear's forward pass."""

    def __init__(self, in_features, out_features, ensemble_size, with_bias=True,
                 init_bias_constant=0, connection="simple", key=None,
                 dtype=jnp.float32, compute_dtype=None):
        if connection == "densenet":
            self.final_out_features = out_features + in_features
        else:
            self.final_out_features = out_features
            if connection == "resnet":
                assert out_features == in_features
            elif connection != "simple":
                raise NotImplementedError
        self.connection = connection
        self.in_features = in_features
        self.out_features = out_features
        self.ensemble_size = ensemble_size
        self.with_bias = with_bias
        self.compute_dtype = compute_dtype

        if key is None:
            key = jax.random.PRNGKey(0)
        keys = jax.random.split(key, 2 * ensemble_size)
        ws, bs = [], []
        for i in range(ensemble_size):
            # PyTorch: nn.init.orthogonal_(weight.T); weight.T is (out, in).
            w = _orthogonal(keys[2 * i], out_features, in_features, dtype).T
            ws.append(w)                                           # (in, out)
            if with_bias:
                if init_bias_constant is None:
                    bound = 1.0 / math.sqrt(in_features)
                    bs.append(jax.random.uniform(
                        keys[2 * i + 1], (1, out_features), dtype,
                        minval=-bound, maxval=bound))
                else:
                    bs.append(jnp.full((1, out_features),
                                       init_bias_constant, dtype))
        self.weight = jnp.stack(ws, 0)                             # (E, in, out)
        self.bias = jnp.stack(bs, 0) if with_bias else None        # (E, 1, out)

    def __call__(self, x):
        # while x.dim() < 3: unsqueeze(0)
        while x.ndim < 3:
            x = x[None, ...]
        assert x.shape[-1] == self.in_features
        assert x.shape[0] in (1, self.ensemble_size)
        return ensemble_linear_pallas(x, self.weight, self.bias, self.connection,
                                      compute_dtype=self.compute_dtype)


# ------------------------------------ main ------------------------------------

if __name__ == "__main__":
    root = jax.random.PRNGKey(0)

    def reference(mod, x):
        while x.ndim < 3:
            x = x[None, ...]
        E = mod.ensemble_size
        xb = jnp.broadcast_to(x, (E,) + x.shape[1:])
        out = jnp.einsum("ebk,ekn->ebn", xb, mod.weight)
        if mod.bias is not None:
            out = out + mod.bias
        if mod.connection == "resnet":
            out = out + xb
        elif mod.connection == "densenet":
            out = jnp.concatenate([out, xb], axis=-1)
        return out

    configs = [
        # E, B, in, out, connection, with_bias, bias_const, x_has_E, cdtype, tol
        (4, 8, 128, 128, "simple",   True,  None, False, None,         2e-3),
        (4, 8, 128, 128, "resnet",   True,  None, True,  None,         2e-3),
        (4, 8, 128, 128, "densenet", True,  None, False, None,         2e-3),  # fused concat
        (3, 5, 32,  48,  "simple",   False, 0,    True,  None,         2e-3),  # padded, no bias
        (2, 6, 24,  40,  "densenet", True,  0.25, True,  None,         2e-3),  # wrapper-concat fallback
        (4, 16, 128, 256, "simple",  True,  None, False, jnp.bfloat16, 2e-2),  # bf16 compute (v5e-style)
        (2, 8, 640, 128, "simple",   True,  None, True,  None,         2e-3),  # multi-K reduction path
    ]

    ok = True
    for idx, (E, B, K, N, conn, wb, bconst, x_ens, cdt, tol) in enumerate(configs):
        ksub = jax.random.fold_in(root, idx)
        xkey, mkey = jax.random.split(ksub)
        lead = (E,) if x_ens else ()
        x = jax.random.normal(xkey, lead + (B, K), jnp.float32)
        mod = MyEnsembleLinearPallas(K, N, E, with_bias=wb,
                                     init_bias_constant=bconst,
                                     connection=conn, key=mkey,
                                     compute_dtype=cdt)
        y = jax.block_until_ready(mod(x))
        ref = jax.block_until_ready(reference(mod, x))

        if y.shape != (E, B, mod.final_out_features):
            ok = False
            print("shape mismatch:", conn, y.shape)
        elif not np.allclose(np.asarray(y, np.float32),
                             np.asarray(ref, np.float32), atol=tol, rtol=tol):
            ok = False
            err = float(np.max(np.abs(np.asarray(y, np.float32)
                                      - np.asarray(ref, np.float32))))
            print("value mismatch:", conn, "max_abs_err =", err)

    if ok:
        print("KERNEL_OK")
</pallas_src>

<mosaic_0001>
module attributes {stable_mosaic.version = 11 : i64} {
  func.func @kernel(%arg0: i32, %arg1: i32, %arg2: i32, %arg3: i32, %arg4: memref<1x8x128xf32, #tpu.memory_space<vmem>>, %arg5: memref<1x128x128xf32, #tpu.memory_space<vmem>>, %arg6: memref<1x1x128xf32, #tpu.memory_space<vmem>>, %arg7: memref<1x8x128xf32, #tpu.memory_space<vmem>>) attributes {dimension_semantics = [#tpu.dimension_semantics<parallel>, #tpu.dimension_semantics<parallel>, #tpu.dimension_semantics<parallel>, #tpu.dimension_semantics<arbitrary>], iteration_bounds = array<i64: 4, 1, 1, 1>, scalar_prefetch = 0 : i64, scratch_operands = 0 : i64, tpu.core_type = #tpu.core_type<tc>, window_params = [{transform_indices = @transform_0, window_bounds = array<i64: 1, 8, 128>}, {transform_indices = @transform_1, window_bounds = array<i64: 1, 128, 128>}, {transform_indices = @transform_2, window_bounds = array<i64: 1, 1, 128>}, {transform_indices = @transform_3, window_bounds = array<i64: 1, 8, 128>}]} {
    %c0 = arith.constant 0 : index
    %c0_0 = arith.constant 0 : index
    %c0_1 = arith.constant 0 : index
    %0 = vector.load %arg4[%c0, %c0_0, %c0_1] : memref<1x8x128xf32, #tpu.memory_space<vmem>>, vector<1x8x128xf32>
    %1 = vector.shape_cast %0 : vector<1x8x128xf32> to vector<8x128xf32>
    %c0_2 = arith.constant 0 : index
    %c0_3 = arith.constant 0 : index
    %c0_4 = arith.constant 0 : index
    %2 = vector.load %arg5[%c0_2, %c0_3, %c0_4] : memref<1x128x128xf32, #tpu.memory_space<vmem>>, vector<1x128x128xf32>
    %3 = vector.shape_cast %2 : vector<1x128x128xf32> to vector<128x128xf32>
    %cst = arith.constant dense<0.000000e+00> : vector<8x128xf32>
    %4 = tpu.matmul %1, %3, %cst {dimension_numbers = #tpu.dot_dimension_numbers<[1], [0], [0], [1], [0, 0, 1, 1], [], []>} : vector<8x128xf32>, vector<128x128xf32>, vector<8x128xf32> -> vector<8x128xf32>
    %c0_5 = arith.constant 0 : index
    %c0_6 = arith.constant 0 : index
    %c0_7 = arith.constant 0 : index
    %5 = vector.load %arg6[%c0_5, %c0_6, %c0_7] : memref<1x1x128xf32, #tpu.memory_space<vmem>>, vector<1x1x128xf32>
    %6 = vector.shape_cast %5 : vector<1x1x128xf32> to vector<1x128xf32>
    %7 = vector.broadcast %6 : vector<1x128xf32> to vector<8x128xf32>
    %8 = arith.addf %4, %7 : vector<8x128xf32>
    %c0_8 = arith.constant 0 : index
    %c0_9 = arith.constant 0 : index
    %c0_10 = arith.constant 0 : index
    %9 = vector.load %arg7[%c0_8, %c0_9, %c0_10] : memref<1x8x128xf32, #tpu.memory_space<vmem>>, vector<1x8x128xf32>
    %10 = vector.shape_cast %9 : vector<1x8x128xf32> to vector<8x128xf32>
    %11 = vector.shape_cast %8 : vector<8x128xf32> to vector<1x8x128xf32>
    tpu.vector_store %arg7[%c0_8, %c0_9, %c0_10], %11 {strides = array<i32>} : memref<1x8x128xf32, #tpu.memory_space<vmem>>, vector<1x8x128xf32>,
    return
  }
  func.func @transform_0(%arg0: i32, %arg1: i32, %arg2: i32, %arg3: i32) -> (i32, i32, i32) {
    %c0_i32 = arith.constant 0 : i32
    %c0_i32_0 = arith.constant 0 : i32
    return %c0_i32, %arg1, %arg3 : i32, i32, i32
  }
  func.func @transform_1(%arg0: i32, %arg1: i32, %arg2: i32, %arg3: i32) -> (i32, i32, i32) {
    %c0_i32 = arith.constant 0 : i32
    return %arg0, %arg3, %arg2 : i32, i32, i32
  }
  func.func @transform_2(%arg0: i32, %arg1: i32, %arg2: i32, %arg3: i32) -> (i32, i32, i32) {
    %c0_i32 = arith.constant 0 : i32
    %c0_i32_0 = arith.constant 0 : i32
    return %arg0, %c0_i32, %arg2 : i32, i32, i32
  }
  func.func @transform_3(%arg0: i32, %arg1: i32, %arg2: i32, %arg3: i32) -> (i32, i32, i32) {
    %c0_i32 = arith.constant 0 : i32
    return %arg0, %arg1, %arg2 : i32, i32, i32
  }
}

</mosaic_0001>

<bundles_post_ra>
// kernel: tpu_custom_call.1
= control target key start
LH: loop header
LB: loop body
LE: loop exit
PB: predicated region body
PF: predicated region fallthrough
CT: control target
= control target key end

     0   :  { %8 = vsyncpa [#allocation3], 0  ;;  %s1090_s0 = inlined_call_operand.hbm [shape: f32[1,8,128], index: 0, kind: input, shape index: {}]   ;;  %s1091_s1 = inlined_call_operand.hbm [shape: f32[4,128,128], index: 1, kind: input, shape index: {}]   ;;  %s1092_s2 = inlined_call_operand.vmem [shape: f32[4,1,128], index: 2, kind: input, shape index: {}]   ;;  %s1093_s3 = inlined_call_operand.hbm [shape: f32[4,8,128], index: 3, kind: output, shape index: {}]  }
   0x1   :  { %9 = vsyncpa [#allocation6], 0 }
   0x2   :  { %11 = vsyncpa [#allocation6 + $0x1], 0 }
   0x3   :  { %12 = vsyncpa [#allocation4], 0 }
   0x4   :  { %14 = vsyncpa [#allocation4 + $0x1], 0  ;;  %s849_s12 = smov 0   ;;  %s851_s13 = smov 0  }
   0x5   :  { %s853_s14 = smov 0   ;;  %s855_s15 = smov 0  }
   0x6   :  { %s857_s16 = smov 0   ;;  %s859_s17 = smov 0  }
   0x7 LB: > { %s503_s18 = sadd.s32 4294967295, %s819_s17   ;;  %s504_s19 = sadd.s32 4294967294, %s819_s17   ;;  %s819_s17 = sphi %s859_s17, %s20_s17   ;;  %s815_s16 = sphi %s857_s16, %s1120_s16   ;;  %s811_s15 = sphi %s855_s15, %s1119_s15   ;;  %s807_s14 = sphi %s853_s14, %s1118_s14   ;;  %s803_s13 = sphi %s851_s13, %s1117_s13   ;;  %s799_s12 = sphi %s849_s12, %s1116_s12  }
   0x8   : > { %s85_s20 = sadd.s32 1, %s807_s14  ;;  %p92_p0 = scmp.ne.s32.totalorder %s807_s14, %s803_s13 }
   0x9   : > { %p93_p1 = scmp.eq.s32.totalorder %s819_s17, 0  ;;  %p98_p2 = scmp.ne.s32.totalorder %s803_s13, %s799_s12 }
   0xa   : > { %p887_p3 = scmp.eq.s32.totalorder %s503_s18, 0  ;;  %p154_p4 = scmp.eq.s32.totalorder %s503_s18, 3 }
   0xb   : > { %p891_p5 = por %p93_p1, %p92_p0  ;;  %p160_p6 = scmp.eq.s32.totalorder %s504_s19, 3 }
   0xc   : > { %s1100_s21 = scalar_select %p887_p3, 1, 0 }
   0xd   : > { %p897_p7 = por %p887_p3, %p98_p2  ;;  %p901_p8 = por %p154_p4, %p92_p0 }
   0xe   : > { %p905_p9 = por %p160_p6, %p98_p2  ;;  %p505_p10 = scmp.ge.s32.totalorder %s819_s17, 1 }
   0xf   : > { %s1102_s23 = scalar_select %p897_p7, 1, 0 }
  0x10   : > { %s1103_s24 = scalar_select %p901_p8, 1, 0 }
  0x11   : > { %s1104_s25 = scalar_select %p905_p9, 1, 0 }
  0x12   : > { %p167_p11 = scmp.lt.s32.totalorder %s819_s17, 5  ;;  %s821_s27 = smov [#allocation2]  }
  0x13   : > { %s183_s28 = sshll.u32 %s821_s27, 4  ;;  %p618_p13 = scmp.lt.s32.totalorder %s819_s17, 4  ;;  %s184_s28 = int_to_ptr.vmem [resolvable:$true] %s183_s28 }
  0x14   : > { %p911_p12 = pnand %p505_p10, %p167_p11  ;;  %s46_s4 = sadd.s32 1, %s815_s16 }
  0x15   : > { %p920_p1 = pnand %p618_p13, %p891_p5  ;;  %p931_p4 = scmp.ge.s32.totalorder %s46_s4, 4 }
  0x16   : > { %s1105_s26 = scalar_select %p911_p12, 1, 0 }
  0x17   : > { %p605_p0 = pneg %p911_p12  ;;  %s194_s6 = sand.u32 1, %s807_s14  }
  0x18   : > { %s1106_s29 = scalar_select %p920_p1, 1, 0 }
  0x19   : > { %p926_p2 = pnand %p605_p0, %p887_p3  ;;  %s675_s9 = scalar_lea.hbm %s1090_s0, 128 }
  0x1a   : > { %s1108_s5 = scalar_select %p931_p4, 1, 0 }
  0x1b   : > { %p676_p5 = scmp.ne.s32.totalorder %s1090_s0, %s675_s9  ;;  %p677_p6 = pneg %p926_p2 }
  0x1c   : > { %p682_p13 = scmp.lt.u32.totalorder %s675_s9, %s1090_s0 }
  0x1d   : > { %p678_p10 = pnand %p677_p6, %p676_p5 }
  0x1f   : > { %p679_p11 = pneg %p678_p10 }
  0x21   : > { %p684_p0 = pnand %p682_p13, %p679_p11 }
  0x23   : > { %687 = shalt.err (!%p684_p0)
}
  0x24   : > { %s688_s22 = scalar_lea.vmem %s184_s28, 128  ;;  %p696_p3 = scmp.lt.s32.totalorder %s184_s28, %s184_s28 }
  0x25   : > { %p689_p9 = scmp.ne.s32.totalorder %s184_s28, %s688_s22  ;;  %p697_p12 = scmp.lt.s32.totalorder %s688_s22, %s688_s22 }
  0x27   : > { %p691_p8 = pnand %p689_p9, %p677_p6  ;;  %p698_p1 = por %p697_p12, %p696_p3 }
  0x29   : > { %p692_p7 = pneg %p691_p8 }
  0x2b   : > { %p699_p4 = pnand %p698_p1, %p692_p7 }
  0x2d   : > { %702 = shalt.err (!%p699_p4)
}
  0x2e   : > { %608 = dma.hbm_to_vmem [thread:$0]  (!%p926_p2), %s1090_s0, 128, %s184_s28, [#allocation3]  }
  0x2f   : > { %p1109_p9 = scmp.ne.s32.totalorder %s1108_s5, 0  ;;  %s508_s8 = sshll.u32 %s194_s6, 7 }
  0x30   : > { %s520_s10 = sshll.u32 %s815_s16, 11  ;;  %s198_s19 = scalar_lea.vmem [#allocation5], %s508_s8 }
  0x31   : > { %s1122_s4 = smov (%p1109_p9, %s46_s4), 0  ;;  %s962_s18 = scalar_lea.hbm %s1091_s1, %s520_s10 }
  0x32   : > { %s78_s9 = ssub.s32 %s815_s16, %s1122_s4  ;;  %s208_s22 = sshll.u32 %s198_s19, 4  ;;  %s969_s22 = int_to_ptr.vmem [resolvable:$true] %s208_s22 }
  0x33   : > { %p83_p3 = scmp.eq.s32.totalorder %s78_s9, 0  ;;  %s971_s5 = scalar_lea.sflag [#allocation6], %s194_s6 }
  0x34   : > { %s703_s27 = scalar_lea.hbm %s962_s18, 2048  ;;  %p1110_p8 = scmp.ne.s32.totalorder %s1106_s29, 0 }
  0x35   : > { %s967_s28 = scalar_select %p83_p3, %s807_s14, %s85_s20  }
  0x36   : > { %p704_p7 = scmp.ne.s32.totalorder %s962_s18, %s703_s27  ;;  %p705_p12 = pneg %p1110_p8 }
  0x37   : > { %s708_s8 = scalar_lea.hbm %s1091_s1, 8192  ;;  %p709_p4 = scmp.lt.u32.totalorder %s962_s18, %s1091_s1 }
  0x38   : > { %p706_p1 = pnand %p705_p12, %p704_p7  ;;  %p710_p5 = scmp.lt.u32.totalorder %s708_s8, %s703_s27 }
  0x39   : > { %p712_p10 = scmp.lt.u32.totalorder %s703_s27, %s962_s18 }
  0x3a   : > { %p707_p2 = pneg %p706_p1  ;;  %p711_p6 = por %p710_p5, %p709_p4 }
  0x3c   : > { %p713_p11 = por %p712_p10, %p711_p6 }
  0x3e   : > { %p714_p13 = pnand %p713_p11, %p707_p2 }
  0x40   : > { %717 = shalt.err (!%p714_p13)
}
  0x41   : > { %s718_s20 = scalar_lea.vmem %s969_s22, 2048  ;;  %s822_s6 = smov [#allocation5]  }
  0x42   : > { %p719_p0 = scmp.ne.s32.totalorder %s969_s22, %s718_s20  ;;  %s723_s11 = sshll.u32 %s822_s6, 4  ;;  %s724_s11 = int_to_ptr.vmem [resolvable:$false] %s723_s11 }
  0x43   : > { %s725_s19 = scalar_lea.vmem %s724_s11, 4096  ;;  %p726_p7 = scmp.lt.s32.totalorder %s969_s22, %s724_s11 }
  0x44   : > { %p721_p9 = pnand %p719_p0, %p705_p12  ;;  %p727_p1 = scmp.lt.s32.totalorder %s725_s19, %s718_s20 }
  0x46   : > { %p722_p3 = pneg %p721_p9  ;;  %p728_p4 = por %p727_p1, %p726_p7 }
  0x48   : > { %p729_p5 = pnand %p728_p4, %p722_p3 }
  0x4a   : > { %732 = shalt.err (!%p729_p5)
}
  0x4b   : > { %s823_s27 = smov 128   ;;  %s824_s7 = smov 8  }
  0x4c   : > { %612 = dma.hbm_to_vmem [thread:$0]  (!%p1110_p8), %s962_s18, 2048, %s969_s22, %s971_s5, %s823_s27, %s823_s27, %s824_s7  }
  0x4d   : > { %p1111_p12 = scmp.ne.s32.totalorder %s1105_s26, 0 }
  0x4e   : > { %p1112_p2 = scmp.ne.s32.totalorder (!%p1111_p12), %s1100_s21, 0 }
  0x4f   : > { %229 = sbr.rel (%p1111_p12) target bundleno = 353 (0x161), region = 32 }
  0x56   : > { %786 = dma.done.wait (%p1112_p2), [#allocation3], 128  }
  0x57   : > { %788 = vsyncadd (%p1112_p2), [#allocation3], 4294967168  ;;  %s1006_s9 = sand.u32 1, %s803_s13   ;;  %p1113_p8 = scmp.ne.s32.totalorder %s1102_s23, 0 }
  0x58   : > { %s513_s8 = sshll.u32 %s1006_s9, 7  ;;  %s236_s10 = scalar_lea.sflag [#allocation6], %s1006_s9 }
  0x59   : > { %s1010_s30 = scalar_lea.vmem [#allocation5], %s513_s8 }
  0x5a   : > { %790 = dma.done.wait (%p1113_p8), %s236_s10, 2048  }
  0x5b   : > { %792 = vsyncadd (%p1113_p8), %s236_s10, 4294965248  ;;  %v825_v0 = vmov 0.0|0.0   ;;  %vm826_vm0 = vmmov 0   ;;  %v827_v1 = vmov 0.0   ;;  %v276_v2 = vld [vmem:[%s1010_s30] sm:$0xff]  ;;  %v277_v3 = vld [vmem:[%s1010_s30 + $0x8] sm:$0xff] }
  0x5c   : > { %573 = vmatprep.subr.bf16.mxu0 %v825_v0  ;;  %570 = vmatprep.mubr.msk.f32.mxu0 %vm826_vm0, %v827_v1  ;;  %v278_v4 = vld [vmem:[%s1010_s30 + $0x10] sm:$0xff]  ;;  %v574_v5 = vpack.c.bf16 %v277_v3, %v276_v2  ;;  %v279_v6 = vld [vmem:[%s1010_s30 + $0x18] sm:$0xff]  ;;  %v280_v8 = vld [vmem:[%s1010_s30 + $0x20] sm:$0xff]  ;;  %p269_p6 = scmp.lt.s32.totalorder %s811_s15, 3  ;;  %s514_s23 = sshll.u32 %s1006_s9, 3 }
  0x5d   : > { %v577_v7 = vpack.c.bf16 %v279_v6, %v278_v4  ;;  %v281_v9 = vld [vmem:[%s1010_s30 + $0x28] sm:$0xff]  ;;  %v282_v11 = vld [vmem:[%s1010_s30 + $0x30] sm:$0xff]  ;;  %v283_v12 = vld [vmem:[%s1010_s30 + $0x38] sm:$0xff]  ;;  %s517_s22 = sshll.u32 %s811_s15, 7  ;;  %s267_s5 = scalar_lea.vmem [#allocation7], %s514_s23 }
  0x5e   : > { %575 = vmatpush3.bf16.msra.mxu0 %v574_v5  ;;  %v580_v10 = vpack.c.bf16 %v281_v9, %v280_v8  ;;  %v583_v13 = vpack.c.bf16 %v283_v12, %v282_v11  ;;  %v284_v14 = vld [vmem:[%s1010_s30 + $0x40] sm:$0xff]  ;;  %v285_v15 = vld [vmem:[%s1010_s30 + $0x48] sm:$0xff]  ;;  %v286_v17 = vld [vmem:[%s1010_s30 + $0x50] sm:$0xff]  ;;  %s270_s21 = scalar_select %p269_p6, %s811_s15, 3 }
  0x5f   : > { %576 = vmatprep.subr.bf16.mxu0 %v825_v0  ;;  %v586_v16 = vpack.c.bf16 %v285_v15, %v284_v14  ;;  %v287_v18 = vld [vmem:[%s1010_s30 + $0x58] sm:$0xff]  ;;  %v288_v20 = vld [vmem:[%s1010_s30 + $0x60] sm:$0xff]  ;;  %v289_v21 = vld [vmem:[%s1010_s30 + $0x68] sm:$0xff]  ;;  %s386_s20 = sshll.u32 %s267_s5, 4  ;;  %s1042_s19 = scalar_lea.hbm %s1093_s3, %s517_s22  ;;  %s1044_s20 = int_to_ptr.vmem [resolvable:$true] %s386_s20 }
  0x60   : > { %v589_v19 = vpack.c.bf16 %v287_v18, %v286_v17  ;;  %v592_v22 = vpack.c.bf16 %v289_v21, %v288_v20  ;;  %v290_v23 = vld [vmem:[%s1010_s30 + $0x70] sm:$0xff]  ;;  %v291_v24 = vld [vmem:[%s1010_s30 + $0x78] sm:$0xff]  ;;  %s274_s18 = scalar_lea.vmem %s1092_s2, %s270_s21  ;;  %s371_s27 = scalar_lea.sflag [#allocation4], %s1006_s9 }
  0x61   : > { %v595_v25 = vpack.c.bf16 %v291_v24, %v290_v23  ;;  %v275_v26 = vld [vmem:[#allocation2] sm:$0xff]  ;;  %s733_s7 = scalar_lea.vmem %s1044_s20, 128  ;;  %p1114_p11 = scmp.ne.s32.totalorder %s1103_s24, 0 }
  0x62   : > { %578 = vmatpush3.bf16.msra.mxu0 %v577_v7  ;;  %v515_v27 = vld [vmem:[%s274_s18] ss:$0 sm:$0xff]  ;;  %p734_p10 = scmp.ne.s32.totalorder %s1044_s20, %s733_s7  ;;  %s828_s15 = smov [#allocation7]  }
  0x63   : > { %579 = vmatprep.subr.bf16.mxu0 %v825_v0  ;;  %s737_s8 = sshll.u32 %s828_s15, 4  ;;  %s738_s8 = int_to_ptr.vmem [resolvable:$false] %s737_s8 }
  0x64   : > { %p735_p13 = pnand %p734_p10, %p1114_p11  ;;  %s739_s10 = scalar_lea.vmem %s738_s8, 256 }
  0x65   : > { %p740_p9 = scmp.lt.s32.totalorder %s1044_s20, %s738_s8  ;;  %p741_p3 = scmp.lt.s32.totalorder %s739_s10, %s733_s7 }
  0x66   : > { %581 = vmatpush3.bf16.msra.mxu0 %v580_v10  ;;  %p736_p0 = pneg %p735_p13 }
  0x67   : > { %582 = vmatprep.subr.bf16.mxu0 %v825_v0  ;;  %p742_p7 = por %p741_p3, %p740_p9 }
  0x69   : > { %p743_p1 = pnand %p742_p7, %p736_p0 }
  0x6a   : > { %584 = vmatpush3.bf16.msra.mxu0 %v583_v13 }
  0x6b   : > { %585 = vmatprep.subr.bf16.mxu0 %v825_v0 }
  0x6e   : > { %587 = vmatpush3.bf16.msra.mxu0 %v586_v16 }
  0x6f   : > { %588 = vmatprep.subr.bf16.mxu0 %v825_v0 }
  0x72   : > { %590 = vmatpush3.bf16.msra.mxu0 %v589_v19 }
  0x73   : > { %591 = vmatprep.subr.bf16.mxu0 %v825_v0 }
  0x76   : > { %593 = vmatpush3.bf16.msra.mxu0 %v592_v22 }
  0x77   : > { %594 = vmatprep.subr.bf16.mxu0 %v825_v0 }
  0x7a   : > { %596 = vmatpush3.bf16.msra.mxu0 %v595_v25 }
  0x7d   : > { %571 = vmatmul.mubr.f32.vlgmr.msra.gmra.mrb[0].mxu0 %v275_v26 }
 0x150   : > { %v365_v28 = vpop.f32.mrb[0].mxu0 }
 0x151   : > { %v366_v29 = vadd.f32 %v515_v27, %v365_v28  ;;  %v572_v30 = vpop.f32.mrb[1].mxu0 }
 0x153   : > { %369 = vst [vmem:[%s267_s5] sm:$0xff] %v366_v29 }
 0x154   : > { %746 = shalt.err (!%p743_p1)
}
 0x155   : > { %s747_s9 = scalar_lea.hbm %s1042_s19, 128  ;;  %s751_s23 = scalar_lea.hbm %s1093_s3, 512 }
 0x156   : > { %p748_p4 = scmp.ne.s32.totalorder %s1042_s19, %s747_s9  ;;  %p752_p2 = scmp.lt.u32.totalorder %s1042_s19, %s1093_s3 }
 0x157   : > { %p753_p8 = scmp.lt.u32.totalorder %s751_s23, %s747_s9  ;;  %p755_p10 = scmp.lt.u32.totalorder %s747_s9, %s1042_s19 }
 0x158   : > { %p749_p5 = pnand %p748_p4, %p1114_p11 }
 0x159   : > { %p754_p6 = por %p753_p8, %p752_p2 }
 0x15a   : > { %p750_p12 = pneg %p749_p5 }
 0x15b   : > { %p756_p13 = por %p755_p10, %p754_p6 }
 0x15d   : > { %p757_p0 = pnand %p756_p13, %p750_p12 }
 0x15f   : > { %760 = shalt.err (!%p757_p0)
}
 0x160   : > { %603 = dma.vmem_to_hbm [thread:$0]  (%p1114_p11), %s1044_s20, 128, %s1042_s19, %s371_s27  }
 0x161 PF: > { %p620_p9 = scmp.ge.s32.totalorder %s819_s17, 2  ;;  %s398_s18 = sand.u32 1, %s799_s12  }
 0x162   : > { %p1115_p3 = scmp.ne.s32.totalorder %s1104_s25, 0  ;;  %s399_s22 = scalar_lea.sflag [#allocation4], %s398_s18 }
 0x164   : > { %p614_p7 = pnand %p620_p9, %p1115_p3 }
 0x166   : > { %794 = dma.done.wait (!%p614_p7), %s399_s22, 128  }
 0x167   : > { %796 = vsyncadd (!%p614_p7), %s399_s22, 4294967168  ;;  %s20_s17 = sadd.s32 1, %s819_s17   ;;  %s1116_s12 = smov %s803_s13 }
 0x168   : > { %p17_p1 = scmp.ge.s32.totalorder %s20_s17, 6   ;;  %s1117_s13 = smov %s807_s14 }
 0x169   : > { %s1118_s14 = smov %s967_s28  ;;  %s1119_s15 = smov %s815_s16 }
 0x16a   : > { %s1120_s16 = smov %s1122_s4  ;;  %19 = sbr.rel (!%p17_p1) target bundleno = 7 (0x7), region = 86 }
 0x171   :  { %404 = vsyncpa [#allocation3], 1 }
 0x172   :  { %406 = vsyncpa [#allocation3 + $0x1], 1 }
 0x173   :  { %407 = vsyncpa [#allocation6], 1 }
 0x174   :  { %409 = vsyncpa [#allocation6 + $0x1], 1 }
 0x175   :  { %410 = vsyncpa [#allocation4], 1 }
 0x176   :  { %412 = vsyncpa [#allocation4 + $0x1], 1 }

</bundles_post_ra>
